<compile_context>
chip_gen: v7x
topology: tpu7x:2x2x1
jax: 0.10.0
libtpu: 0.0.40
codegen_flags: <defaults>
</compile_context>

<pallas_src>
import functools

import jax
import jax.numpy as jnp
from jax.experimental import pallas as pl
from jax.experimental.pallas import tpu as pltpu


def manet_kernel(x_ref, w_att_ref, b_att_ref, w_clf_ref, b_clf_ref, out_ref, *,
                 approx_recip: bool):
    # x_ref     : (bB, S, H)    activations (f32 or bf16)
    # w_att_ref : (A, H)        attention weight, PyTorch (out, in) layout
    # b_att_ref : (1, A)        attention bias row (f32)
    # w_clf_ref : (L_pad, H)    classifier weight, zero-padded to lane-dense L_pad
    # b_clf_ref : (1, L_pad)    classifier bias row, zero-padded (f32)
    # out_ref   : (bB, L_pad)   f32, one dense slab per grid step
    x = x_ref[...]
    bB, S, H = x.shape
    A = w_att_ref.shape[0]
    L_pad = w_clf_ref.shape[0]

    # --- attention logits: one consolidated MXU pass, M = bB*S, N = A --------
    logits = jax.lax.dot_general(
        x.reshape(bB * S, H), w_att_ref[...],
        dimension_numbers=(((1,), (1,)), ((), ())),   # contract H (rhs transposed)
        preferred_element_type=jnp.float32)            # (bB*S, A) f32
    logits = logits + b_att_ref[...]                    # (1, A) lane broadcast
    logits = logits.reshape(bB, S, A)

    # --- softmax over the sequence axis (axis=1), f32 math --------------------
    m = jnp.max(logits, axis=1, keepdims=True)          # (bB, 1, A)
    e = jnp.exp(logits - m)
    denom = jnp.sum(e, axis=1, keepdims=True)
    if approx_recip:
        # Reduced-precision path only: EUP approximate reciprocal is ~free.
        atten_sm = e * pl.reciprocal(denom, approx=True)
    else:
        # Exact divide for the strict-tolerance f32 path.
        atten_sm = e / denom

    # --- attention pooling: contract S (tiny K) on the VPU --------------------
    # pooled[b, a, h] = sum_s atten_sm[b, s, a] * x[b, s, h]
    # (dtype promotion keeps the product / accumulation in f32 even for bf16 x)
    pooled = jnp.sum(atten_sm[:, :, :, None] * x[:, :, None, :], axis=1)  # (bB,A,H)

    # --- classifier: one consolidated MXU pass, M = bB*A, N = L_pad -----------
    clf = jax.lax.dot_general(
        pooled.reshape(bB * A, H).astype(w_clf_ref.dtype), w_clf_ref[...],
        dimension_numbers=(((1,), (1,)), ((), ())),
        preferred_element_type=jnp.float32)              # (bB*A, L_pad) f32
    clf = (clf + b_clf_ref[...]).reshape(bB, A, L_pad)

    # --- MaxPool1d over the A heads -> one dense (bB, L_pad) store ------------
    out_ref[...] = jnp.max(clf, axis=1).astype(out_ref.dtype)


def manetwork_forward(x, w_att, b_att, w_clf, b_clf, *,
                      block_B=None, compute_dtype=None):
    """Pallas forward for MANetwork.

    compute_dtype: optional matmul-operand dtype (e.g. jnp.bfloat16 -- the MXU
                   is bf16-native on v5e/v6e/v7x).  Softmax, biases and all
                   accumulation stay float32.
    block_B:       batch rows per grid step.  Defaults to B (single step):
                   at small shapes the kernel is step-overhead bound and
                   v5e/v6e have one TensorCore.  If splitting (large B, v7x),
                   use a multiple of 8 so the (block_B, 128) output store stays
                   dense, and keep 2*block_B*S*H*itemsize within the
                   per-generation VMEM budget (v7x has only 64 MiB).
    """
    B, S, H = x.shape
    A = w_att.shape[0]
    L = w_clf.shape[0]

    if block_B is None:
        block_B = B                       # single grid step by default
    if B % block_B != 0:
        raise ValueError(f"batch {B} must be divisible by block_B {block_B}")
    if block_B != B and block_B % 8 != 0:
        raise ValueError("block_B must equal B or be a multiple of 8 so the "
                         "(block_B, L_pad) output store is a dense 8x128 tile")
    num_blocks = B // block_B

    # Lane-dense classifier output: pad L to a multiple of 128 in the wrapper
    # (padded lanes carry zeros and are sliced off after the call).
    L_pad = ((L + 127) // 128) * 128
    w_clf_p = jnp.zeros((L_pad, H), w_clf.dtype).at[:L, :].set(w_clf)
    b_clf_p = jnp.zeros((1, L_pad), jnp.float32).at[:, :L].set(
        b_clf.astype(jnp.float32).reshape(1, L))
    b_att_r = b_att.astype(jnp.float32).reshape(1, A)  # row bias for (bB*S, A) logits

    if compute_dtype is not None:
        x = x.astype(compute_dtype)
        w_att = w_att.astype(compute_dtype)
        w_clf_p = w_clf_p.astype(compute_dtype)

    itemsize = jnp.dtype(x.dtype).itemsize
    flops = 2 * B * S * H * A + 2 * B * S * A * H + 2 * B * A * H * L
    bytes_accessed = (B * S * H * itemsize
                      + A * H * jnp.dtype(w_att.dtype).itemsize + A * 4
                      + L_pad * H * jnp.dtype(w_clf_p.dtype).itemsize + L_pad * 4
                      + B * L_pad * 4)

    kernel = functools.partial(manet_kernel,
                               approx_recip=compute_dtype is not None)

    out = pl.pallas_call(
        kernel,
        out_shape=jax.ShapeDtypeStruct((B, L_pad), jnp.float32),
        grid=(num_blocks,),
        in_specs=[
            pl.BlockSpec((block_B, S, H), lambda i: (i, 0, 0)),  # x, batch chunk
            pl.BlockSpec((A, H), lambda i: (0, 0)),              # W_att (full)
            pl.BlockSpec((1, A), lambda i: (0, 0)),              # b_att row (full)
            pl.BlockSpec((L_pad, H), lambda i: (0, 0)),          # W_clf padded (full)
            pl.BlockSpec((1, L_pad), lambda i: (0, 0)),          # b_clf padded (full)
        ],
        out_specs=pl.BlockSpec((block_B, L_pad), lambda i: (i, 0)),
        compiler_params=pltpu.CompilerParams(
            dimension_semantics=("parallel",)),
        cost_estimate=pl.CostEstimate(
            flops=flops,
            transcendentals=B * S * A,
            bytes_accessed=bytes_accessed),
    )(x, w_att, b_att_r, w_clf_p, b_clf_p)

    return {"out": out[:, :L]}


def _xavier_uniform(key, shape):
    fan_out, fan_in = shape
    bound = (6.0 / (fan_in + fan_out)) ** 0.5
    return jax.random.uniform(key, shape, jnp.float32, -bound, bound)


def _bias_init(key, shape, fan_in):
    bound = 1.0 / (fan_in ** 0.5)
    return jax.random.uniform(key, shape, jnp.float32, -bound, bound)


def _reference(x, w_att, b_att, w_clf, b_clf):
    # Pure-JAX mirror of the PyTorch forward (dropout = identity at inference).
    atten = jnp.einsum("bsh,ah->bsa", x, w_att) + b_att[0]      # (B, S, A)
    atten = jnp.swapaxes(atten, 1, 2)                           # (B, A, S)
    atten_sm = jax.nn.softmax(atten, axis=-1)
    pooled = jnp.einsum("bas,bsh->bah", atten_sm, x)            # (B, A, H)
    clf = jnp.einsum("bah,lh->bal", pooled, w_clf) + b_clf[0]   # (B, A, L)
    return jnp.max(clf, axis=1)                                 # (B, L)


if __name__ == "__main__":
    # Small shapes consistent with the module's forward.
    B, S, H = 2, 8, 32        # batch, sequence, hidden_size
    A, L = 4, 6               # atten_num (heads), label_num

    key = jax.random.PRNGKey(0)
    kx, k1, k2, k3, k4 = jax.random.split(key, 5)

    x = jax.random.normal(kx, (B, S, H), jnp.float32)
    w_att = _xavier_uniform(k1, (A, H))          # nn.Linear(hidden, atten_num).weight
    b_att = _bias_init(k2, (1, A), H)            # its bias
    w_clf = _xavier_uniform(k3, (L, H))          # nn.Linear(hidden, label_num).weight
    b_clf = _bias_init(k4, (1, L), H)            # its bias
    # TODO(synk): dropout is identity here (inference); training-mode dropout not implemented.

    ref = _reference(x, w_att, b_att, w_clf, b_clf)

    # f32 path (exact softmax divide).  Tolerance allows for the TPU's default
    # f32-matmul handling (bf16 passes) possibly differing between the Pallas
    # kernel and the XLA-compiled reference.
    out = manetwork_forward(x, w_att, b_att, w_clf, b_clf)
    jax.block_until_ready(out["out"])
    assert out["out"].shape == (B, L)
    assert jnp.allclose(out["out"], ref, atol=2e-2, rtol=2e-2), "f32 mismatch vs reference"

    # bf16 matmul-operand path (bf16-native MXU on all generations); softmax
    # and accumulation stay f32, EUP approx reciprocal allowed here.
    out_bf16 = manetwork_forward(x, w_att, b_att, w_clf, b_clf,
                                 compute_dtype=jnp.bfloat16)
    jax.block_until_ready(out_bf16["out"])
    assert out_bf16["out"].shape == (B, L)
    assert jnp.allclose(out_bf16["out"], ref, atol=5e-2, rtol=5e-2), "bf16 mismatch vs reference"

    # Larger batch, multi-step grid: 8 batch rows per step -> dense (8, 128)
    # output tiles across 2 "parallel" grid steps.
    B2 = 16
    x2 = jax.random.normal(jax.random.PRNGKey(1), (B2, S, H), jnp.float32)
    ref2 = _reference(x2, w_att, b_att, w_clf, b_clf)
    out2 = manetwork_forward(x2, w_att, b_att, w_clf, b_clf, block_B=8)
    jax.block_until_ready(out2["out"])
    assert jnp.allclose(out2["out"], ref2, atol=2e-2, rtol=2e-2), "batched mismatch vs reference"

    print("KERNEL_OK")
</pallas_src>

<mosaic_0001>
module attributes {stable_mosaic.version = 11 : i64} {
  func.func @manet_kernel(%arg0: i32, %arg1: memref<2x8x32xf32, #tpu.memory_space<vmem>>, %arg2: memref<4x32xf32, #tpu.memory_space<vmem>>, %arg3: memref<1x4xf32, #tpu.memory_space<vmem>>, %arg4: memref<128x32xf32, #tpu.memory_space<vmem>>, %arg5: memref<1x128xf32, #tpu.memory_space<vmem>>, %arg6: memref<2x128xf32, #tpu.memory_space<vmem>>) attributes {dimension_semantics = [#tpu.dimension_semantics<parallel>], iteration_bounds = array<i64: 1>, scalar_prefetch = 0 : i64, scratch_operands = 0 : i64, tpu.core_type = #tpu.core_type<tc>, window_params = [{transform_indices = @transform_0, window_bounds = array<i64: 2, 8, 32>}, {pipeline_mode = #tpu.pipeline_mode<synchronous>, transform_indices = @transform_1, window_bounds = array<i64: 4, 32>}, {pipeline_mode = #tpu.pipeline_mode<synchronous>, transform_indices = @transform_2, window_bounds = array<i64: 1, 4>}, {pipeline_mode = #tpu.pipeline_mode<synchronous>, transform_indices = @transform_3, window_bounds = array<i64: 128, 32>}, {pipeline_mode = #tpu.pipeline_mode<synchronous>, transform_indices = @transform_4, window_bounds = array<i64: 1, 128>}, {transform_indices = @transform_5, window_bounds = array<i64: 2, 128>}]} {
    %c0 = arith.constant 0 : index
    %c0_0 = arith.constant 0 : index
    %c0_1 = arith.constant 0 : index
    %0 = vector.load %arg1[%c0, %c0_0, %c0_1] : memref<2x8x32xf32, #tpu.memory_space<vmem>>, vector<2x8x32xf32>
    %1 = vector.shape_cast %0 : vector<2x8x32xf32> to vector<16x32xf32>
    %c0_2 = arith.constant 0 : index
    %c0_3 = arith.constant 0 : index
    %2 = vector.load %arg2[%c0_2, %c0_3] : memref<4x32xf32, #tpu.memory_space<vmem>>, vector<4x32xf32>
    %cst = arith.constant dense<0.000000e+00> : vector<16x4xf32>
    %3 = tpu.matmul %1, %2, %cst {dimension_numbers = #tpu.dot_dimension_numbers<[1], [1], [0], [0], [0, 0, 1, 0], [], []>} : vector<16x32xf32>, vector<4x32xf32>, vector<16x4xf32> -> vector<16x4xf32>
    %c0_4 = arith.constant 0 : index
    %c0_5 = arith.constant 0 : index
    %4 = vector.load %arg3[%c0_4, %c0_5] : memref<1x4xf32, #tpu.memory_space<vmem>>, vector<1x4xf32>
    %5 = vector.broadcast %4 : vector<1x4xf32> to vector<16x4xf32>
    %6 = arith.addf %3, %5 : vector<16x4xf32>
    %7 = vector.shape_cast %6 : vector<16x4xf32> to vector<2x8x4xf32>
    %cst_6 = arith.constant dense<0xFF800000> : vector<2x4xf32>
    %8 = vector.multi_reduction <maximumf>, %7, %cst_6 [1] : vector<2x8x4xf32> to vector<2x4xf32>
    %9 = vector.shape_cast %8 : vector<2x4xf32> to vector<2x1x4xf32>
    %10 = vector.broadcast %9 : vector<2x1x4xf32> to vector<2x8x4xf32>
    %11 = arith.subf %7, %10 : vector<2x8x4xf32>
    %12 = math.exp %11 : vector<2x8x4xf32>
    %cst_7 = arith.constant dense<0.000000e+00> : vector<2x4xf32>
    %13 = vector.multi_reduction <add>, %12, %cst_7 [1] : vector<2x8x4xf32> to vector<2x4xf32>
    %14 = vector.shape_cast %13 : vector<2x4xf32> to vector<2x1x4xf32>
    %15 = vector.broadcast %14 : vector<2x1x4xf32> to vector<2x8x4xf32>
    %16 = arith.divf %12, %15 : vector<2x8x4xf32>
    %17 = vector.shape_cast %16 : vector<2x8x4xf32> to vector<2x8x4x1xf32>
    %18 = vector.shape_cast %0 : vector<2x8x32xf32> to vector<2x8x1x32xf32>
    %19 = vector.broadcast %17 : vector<2x8x4x1xf32> to vector<2x8x4x32xf32>
    %20 = vector.broadcast %18 : vector<2x8x1x32xf32> to vector<2x8x4x32xf32>
    %21 = arith.mulf %19, %20 : vector<2x8x4x32xf32>
    %cst_8 = arith.constant dense<0.000000e+00> : vector<2x4x32xf32>
    %22 = vector.multi_reduction <add>, %21, %cst_8 [1] : vector<2x8x4x32xf32> to vector<2x4x32xf32>
    %23 = vector.shape_cast %22 : vector<2x4x32xf32> to vector<8x32xf32>
    %c0_9 = arith.constant 0 : index
    %c0_10 = arith.constant 0 : index
    %24 = vector.load %arg4[%c0_9, %c0_10] : memref<128x32xf32, #tpu.memory_space<vmem>>, vector<128x32xf32>
    %cst_11 = arith.constant dense<0.000000e+00> : vector<8x128xf32>
    %25 = tpu.matmul %23, %24, %cst_11 {dimension_numbers = #tpu.dot_dimension_numbers<[1], [1], [0], [0], [0, 0, 1, 0], [], []>} : vector<8x32xf32>, vector<128x32xf32>, vector<8x128xf32> -> vector<8x128xf32>
    %c0_12 = arith.constant 0 : index
    %c0_13 = arith.constant 0 : index
    %26 = vector.load %arg5[%c0_12, %c0_13] : memref<1x128xf32, #tpu.memory_space<vmem>>, vector<1x128xf32>
    %27 = vector.broadcast %26 : vector<1x128xf32> to vector<8x128xf32>
    %28 = arith.addf %25, %27 : vector<8x128xf32>
    %29 = vector.shape_cast %28 : vector<8x128xf32> to vector<2x4x128xf32>
    %cst_14 = arith.constant dense<0xFF800000> : vector<2x128xf32>
    %30 = vector.multi_reduction <maximumf>, %29, %cst_14 [1] : vector<2x4x128xf32> to vector<2x128xf32>
    %c0_15 = arith.constant 0 : index
    %c0_16 = arith.constant 0 : index
    %31 = vector.load %arg6[%c0_15, %c0_16] : memref<2x128xf32, #tpu.memory_space<vmem>>, vector<2x128xf32>
    tpu.vector_store %arg6[%c0_15, %c0_16], %30 {strides = array<i32>} : memref<2x128xf32, #tpu.memory_space<vmem>>, vector<2x128xf32>,
    return
  }
  func.func @transform_0(%arg0: i32) -> (i32, i32, i32) {
    %c0_i32 = arith.constant 0 : i32
    %c0_i32_0 = arith.constant 0 : i32
    %c0_i32_1 = arith.constant 0 : i32
    return %arg0, %c0_i32, %c0_i32_0 : i32, i32, i32
  }
  func.func @transform_1(%arg0: i32) -> (i32, i32) {
    %c0_i32 = arith.constant 0 : i32
    %c0_i32_0 = arith.constant 0 : i32
    %c0_i32_1 = arith.constant 0 : i32
    return %c0_i32, %c0_i32_0 : i32, i32
  }
  func.func @transform_2(%arg0: i32) -> (i32, i32) {
    %c0_i32 = arith.constant 0 : i32
    %c0_i32_0 = arith.constant 0 : i32
    %c0_i32_1 = arith.constant 0 : i32
    return %c0_i32, %c0_i32_0 : i32, i32
  }
  func.func @transform_3(%arg0: i32) -> (i32, i32) {
    %c0_i32 = arith.constant 0 : i32
    %c0_i32_0 = arith.constant 0 : i32
    %c0_i32_1 = arith.constant 0 : i32
    return %c0_i32, %c0_i32_0 : i32, i32
  }
  func.func @transform_4(%arg0: i32) -> (i32, i32) {
    %c0_i32 = arith.constant 0 : i32
    %c0_i32_0 = arith.constant 0 : i32
    %c0_i32_1 = arith.constant 0 : i32
    return %c0_i32, %c0_i32_0 : i32, i32
  }
  func.func @transform_5(%arg0: i32) -> (i32, i32) {
    %c0_i32 = arith.constant 0 : i32
    %c0_i32_0 = arith.constant 0 : i32
    return %arg0, %c0_i32 : i32, i32
  }
}

</mosaic_0001>

<bundles_post_ra>
// kernel: tpu_custom_call.1
= control target key start
LH: loop header
LB: loop body
LE: loop exit
PB: predicated region body
PF: predicated region fallthrough
CT: control target
= control target key end

     0   :  { %vm31_vm0 = vcmask 261120   ;;  %s1037_s0 = inlined_call_operand.vmem [shape: f32[2,8,32], index: 0, kind: input, shape index: {}]   ;;  %s1038_s1 = inlined_call_operand.vmem [shape: f32[4,32], index: 1, kind: input, shape index: {}]   ;;  %s1039_s2 = inlined_call_operand.vmem [shape: f32[1,4], index: 2, kind: input, shape index: {}]   ;;  %s1040_s3 = inlined_call_operand.vmem [shape: f32[128,32], index: 3, kind: input, shape index: {}]   ;;  %s1041_s4 = inlined_call_operand.vmem [shape: f32[1,128], index: 4, kind: input, shape index: {}]   ;;  %s1042_s5 = inlined_call_operand.hbm [shape: f32[2,128], index: 5, kind: output, shape index: {}]  }
   0x1   :  { %v23_v0 = vld [vmem:[%s1038_s1] sm:$0xf] }
   0x2   :  { %v870_v1 = vld [vmem:[%s1037_s0] sm:$0xff]  ;;  %718 = vmatprep.subr.msk.mxu0 %vm31_vm0, %v23_v0 }
   0x3   :  { %720 = vmatprep.mubr.msk.f32.mxu0 %vm31_vm0, %v870_v1 }
   0x4   :  { %10 = vsyncpa [#allocation3], 0  ;;  %719 = vmatpush3.xpose.msk.msra.mxu0 %vm31_vm0, %v23_v0  ;;  %v879_v2 = vld [vmem:[%s1037_s0 + $0x8] sm:$0xff]  ;;  %v492_v3 = vld [vmem:[%s1040_s3] sm:$0xff]  ;;  %v829_v6 = vmov 0.0|0.0   ;;  %vm116_vm2 = vcmask 31744   ;;  %v155_v56 = vlaneseq }
   0x5   :  { %v493_v4 = vld [vmem:[%s1040_s3 + $0x8] sm:$0xff]  ;;  %vm891_vm1 = vmpackc.low %vm31_vm0, %vm31_vm0  ;;  %758 = vmatprep.subr.bf16.mxu1 %v829_v6  ;;  %v494_v8 = vld [vmem:[%s1040_s3 + $0x10] sm:$0xff]  ;;  %vm830_vm3 = vmmov 0   ;;  %vm461_vm4 = vcmask 257024   ;;  %vm641_vm5 = vcmask 1043456   ;;  %s833_s29 = smov [#allocation2]  }
   0x6   :  { %v759_v7 = vpack.c.bf16 %v493_v4, %v492_v3  ;;  %v495_v9 = vld [vmem:[%s1040_s3 + $0x18] sm:$0xff]  ;;  %v496_v11 = vld [vmem:[%s1040_s3 + $0x20] sm:$0xff]  ;;  %v497_v12 = vld [vmem:[%s1040_s3 + $0x28] sm:$0xff]  ;;  %v933_v57 = vshrl.u32 %v155_v56, 7  ;;  %s668_s30 = sshll.u32 %s833_s29, 4  ;;  %vm658_vm6 = vcmask 1041409   ;;  %s669_s30 = int_to_ptr.vmem [resolvable:$true] %s668_s30 }
   0x7   :  { %721 = vmatmul.mubr.msk.f32.vlgmr.msra.gmra.mrb[0].mxu0 %vm31_vm0, %v879_v2  ;;  %v763_v10 = vpack.c.bf16 %v495_v9, %v494_v8  ;;  %v767_v13 = vpack.c.bf16 %v497_v12, %v496_v11  ;;  %v498_v14 = vld [vmem:[%s1040_s3 + $0x30] sm:$0xff]  ;;  %v499_v15 = vld [vmem:[%s1040_s3 + $0x38] sm:$0xff]  ;;  %v676_v17 = vld [vmem:[%s1039_s2] ss:$0 sm:$0xff]  ;;  %p810_p1 = scmp.lt.s32.totalorder %s669_s30, %s669_s30 }
   0x8   :  { %761 = vmatpush3.bf16.xpose.msk.msra.mxu1 %vm891_vm1, %v759_v7  ;;  %v771_v16 = vpack.c.bf16 %v499_v15, %v498_v14  ;;  %v500_v58 = vld [vmem:[%s1040_s3 + $0x40] sm:$0xff]  ;;  %v501_v59 = vld [vmem:[%s1040_s3 + $0x48] sm:$0xff]  ;;  %v942_v61 = vsub.s32 0, %v933_v57  ;;  %v164_v7 = vsub.s32 1, %v933_v57  ;;  %v502_v9 = vld [vmem:[%s1040_s3 + $0x50] sm:$0xff]  ;;  %v171_v12 = vsub.s32 2, %v933_v57 }
   0x9   :  { %762 = vmatprep.subr.bf16.mxu1 %v829_v6  ;;  %v775_v60 = vpack.c.bf16 %v501_v59, %v500_v58 }
  0x10   :  { %765 = vmatpush3.bf16.xpose.msk.msra.mxu1 %vm891_vm1, %v763_v10  ;;  %v503_v10 = vld [vmem:[%s1040_s3 + $0x58] sm:$0xff] }
  0x11   :  { %766 = vmatprep.subr.bf16.mxu1 %v829_v6 }
  0x18   :  { %769 = vmatpush3.bf16.xpose.msk.msra.mxu1 %vm891_vm1, %v767_v13  ;;  %v779_v13 = vpack.c.bf16 %v503_v10, %v502_v9 }
  0x19   :  { %770 = vmatprep.subr.bf16.mxu1 %v829_v6 }
  0x20   :  { %773 = vmatpush3.bf16.xpose.msk.msra.mxu1 %vm891_vm1, %v771_v16  ;;  %v178_v16 = vsub.s32 3, %v933_v57 }
  0x21   :  { %774 = vmatprep.subr.bf16.mxu1 %v829_v6 }
  0x28   :  { %777 = vmatpush3.bf16.xpose.msk.msra.mxu1 %vm891_vm1, %v775_v60 }
  0x29   :  { %778 = vmatprep.subr.bf16.mxu1 %v829_v6 }
  0x30   :  { %781 = vmatpush3.bf16.xpose.msk.msra.mxu1 %vm891_vm1, %v779_v13 }
  0x31   :  { %782 = vmatprep.subr.bf16.mxu1 %v829_v6 }
  0xda   :  { %v722_v18 = vpop.f32.mrb[0].mxu0 }
  0xdb   :  { %v113_v19 = vadd.f32 %v722_v18, %v676_v17  ;;  %v107_v20 = vpop.f32.mrb[1].mxu0  ;;  %v504_v18 = vld [vmem:[%s1040_s3 + $0x60] sm:$0xff] }
  0xdc   :  { %v108_v21 = vadd.f32 %v676_v17, %v107_v20 }
  0xdd   :  { %v124_v22 = vsel %vm116_vm2, %v113_v19, -inf }
  0xde   :  { %v125_v23 = vrot.slane %v124_v22, 4  ;;  %v117_v24 = vsel %vm116_vm2, %v108_v21, -inf }
  0xdf   :  { %v118_v25 = vrot.slane %v117_v24, 4 }
  0xe0   :  { %v126_v26 = vmax.f32 %v124_v22, %v125_v23  ;;  %v185_v22 = vsub.s32 4, %v933_v57 }
  0xe1   :  { %v119_v27 = vmax.f32 %v117_v24, %v118_v25  ;;  %v192_v25 = vsub.s32 5, %v933_v57 }
  0xe2   :  { %v127_v28 = vrot.slane %v126_v26, 2 }
  0xe3   :  { %v120_v29 = vrot.slane %v119_v27, 2 }
  0xe4   :  { %v128_v30 = vmax.f32 %v126_v26, %v127_v28  ;;  %v507_v28 = vld [vmem:[%s1040_s3 + $0x78] sm:$0xff] }
  0xe5   :  { %v121_v31 = vmax.f32 %v119_v27, %v120_v29  ;;  %v506_v27 = vld [vmem:[%s1040_s3 + $0x70] sm:$0xff] }
  0xe6   :  { %v129_v32 = vrot.slane %v128_v30, 1  ;;  %v787_v29 = vpack.c.bf16 %v507_v28, %v506_v27 }
  0xe7   :  { %v122_v33 = vrot.slane %v121_v31, 1 }
  0xe8   :  { %v130_v34 = vmax.f32 %v128_v30, %v129_v32 }
  0xe9   :  { %v123_v35 = vmax.f32 %v121_v31, %v122_v33  ;;  %v199_v31 = vsub.s32 6, %v933_v57  ;;  %v206_v33 = vsub.s32 7, %v933_v57 }
  0xea   :  { %v132_v36 = vsub.f32 %v113_v19, %v130_v34  ;;  %v505_v19 = vld [vmem:[%s1040_s3 + $0x68] sm:$0xff]  ;;  %v831_v34 = vmov 0.0  }
  0xeb   :  { %v131_v37 = vsub.f32 %v108_v21, %v123_v35  ;;  %v783_v20 = vpack.c.bf16 %v505_v19, %v504_v18  ;;  %755 = vmatprep.mubr.msk.f32.mxu1 %vm830_vm3, %v831_v34 }
  0xec   :  { %v135_v38 = vmul.f32 1.442695, %v132_v36 }
  0xed   :  { %v133_v39 = vmul.f32 1.442695, %v131_v37  ;;  %785 = vmatpush3.bf16.xpose.msk.msra.mxu1 %vm891_vm1, %v783_v20 }
  0xee   :  { %797 = vpow2.f32 %v135_v38  ;;  %786 = vmatprep.subr.bf16.mxu1 %v829_v6  ;;  %v832_v38 = vmov 1966171168  }
  0xef   :  { %799 = vpow2.f32 %v133_v39  ;;  %v269_v39 = vunpack.c.l.s4 %v832_v38 }
  0xf5   :  { %789 = vmatpush3.bf16.xpose.msk.msra.mxu1 %vm891_vm1, %v787_v29 }
  0xf8   :  { %v798_v40 = vpop.eup %797 }
  0xf9   :  { %v800_v41 = vpop.eup %799  ;;  %v144_v42 = vsel %vm116_vm2, %v798_v40, 0.0 }
  0xfa   :  { %v145_v43 = vrot.slane %v144_v42, 4  ;;  %v137_v44 = vsel %vm116_vm2, %v800_v41, 0.0 }
  0xfb   :  { %v138_v45 = vrot.slane %v137_v44, 4 }
  0xfc   :  { %v146_v46 = vadd.f32 %v145_v43, %v144_v42 }
  0xfd   :  { %v139_v47 = vadd.f32 %v138_v45, %v137_v44 }
  0xfe   :  { %v147_v48 = vrot.slane %v146_v46, 2 }
  0xff   :  { %v140_v49 = vrot.slane %v139_v47, 2 }
 0x100   :  { %v148_v50 = vadd.f32 %v147_v48, %v146_v46  ;;  %v267_v48 = vcombine.high %v870_v1, %v870_v1 }
 0x101   :  { %v141_v51 = vadd.f32 %v140_v49, %v139_v47  ;;  %v316_v47 = vcombine.high %v879_v2, %v879_v2 }
 0x102   :  { %v149_v52 = vrot.slane %v148_v50, 1 }
 0x103   :  { %v142_v53 = vrot.slane %v141_v51, 1 }
 0x104   :  { %v150_v54 = vadd.f32 %v149_v52, %v148_v50 }
 0x105   :  { %v143_v55 = vadd.f32 %v142_v53, %v141_v51 }
 0x106   :  { %801 = vrcp.f32 %v150_v54 }
 0x107   :  { %803 = vrcp.f32 %v143_v55 }
 0x110   :  { %v802_v62 = vpop.eup %801 }
 0x111   :  { %v804_v63 = vpop.eup %803  ;;  %v154_v0 = vmul.f32 %v802_v62, %v798_v40  ;;  %v270_v40 = vunpack.c.0.s8 %v269_v39 }
 0x112   :  { %v152_v3 = vmul.f32 %v804_v63, %v800_v41 }
 0x113   :  { %v214_v4 = vrot.slane %v154_v0, %v942_v61  ;;  %v221_v11 = vrot.slane %v154_v0, %v164_v7  ;;  %v228_v15 = vrot.slane %v154_v0, %v171_v12  ;;  %v235_v21 = vrot.slane %v154_v0, %v178_v16 }
 0x114   :  { %v158_v8 = vrot.slane %v152_v3, %v942_v61  ;;  %v165_v14 = vrot.slane %v152_v3, %v164_v7  ;;  %v172_v17 = vrot.slane %v152_v3, %v171_v12  ;;  %v179_v23 = vrot.slane %v152_v3, %v178_v16 }
 0x115   :  { %216 = vbcast.lane.b32.xlu1 %v214_v4, 256  ;;  %v242_v24 = vrot.slane %v154_v0, %v185_v22  ;;  %v186_v26 = vrot.slane %v152_v3, %v185_v22  ;;  %v249_v30 = vrot.slane %v154_v0, %v192_v25  ;;  %v193_v32 = vrot.slane %v152_v3, %v192_v25 }
 0x116   :  { %160 = vbcast.lane.b32.xlu0 %v158_v8, 256  ;;  %v256_v6 = vrot.slane %v154_v0, %v199_v31  ;;  %v200_v35 = vrot.slane %v152_v3, %v199_v31  ;;  %v263_v36 = vrot.slane %v154_v0, %v206_v33  ;;  %v207_v37 = vrot.slane %v152_v3, %v206_v33 }
 0x117   :  { %v273_v5 = vsub.s32 %v270_v40, %v933_v57 }
 0x119   :  { %223 = vbcast.lane.b32.xlu1 %v221_v11, 256  ;;  %v323_v41 = vrot.slane %v879_v2, %v273_v5  ;;  %v274_v42 = vrot.slane %v870_v1, %v273_v5  ;;  %v330_v56 = vrot.slane %v316_v47, %v273_v5  ;;  %v281_v57 = vrot.slane %v267_v48, %v273_v5 }
 0x11a   :  { %167 = vbcast.lane.b32.xlu0 %v165_v14, 256 }
 0x11b   :  { %v331_v45 = vcombine.high %v323_v41, %v323_v41  ;;  %v282_v46 = vcombine.high %v274_v42, %v274_v42  ;;  %v339_v50 = vrot.slane %v323_v41, %v273_v5  ;;  %v290_v53 = vrot.slane %v274_v42, %v273_v5 }
 0x11c   :  { %v332_v0 = vcombine.high %v330_v56, %v330_v56  ;;  %v283_v1 = vcombine.high %v281_v57, %v281_v57  ;;  %v346_v8 = vrot.slane %v330_v56, %v273_v5  ;;  %v297_v12 = vrot.slane %v281_v57, %v273_v5 }
 0x11d   :  { %230 = vbcast.lane.b32.xlu1 %v228_v15, 256  ;;  %v353_v51 = vrot.slane %v331_v45, %v273_v5  ;;  %v304_v54 = vrot.slane %v282_v46, %v273_v5  ;;  %v361_v55 = vcombine.high %v339_v50, %v339_v50  ;;  %v312_v59 = vcombine.high %v290_v53, %v290_v53 }
 0x11e   :  { %174 = vbcast.lane.b32.xlu0 %v172_v17, 256  ;;  %v400_v4 = vrot.slane %v339_v50, %v942_v61  ;;  %v368_v9 = vrot.slane %v290_v53, %v942_v61  ;;  %v360_v16 = vrot.slane %v332_v0, %v273_v5  ;;  %v311_v19 = vrot.slane %v283_v1, %v273_v5 }
 0x11f   :  { %v404_v60 = vrot.slane %v353_v51, %v942_v61  ;;  %v363_v63 = vcombine.high %v353_v51, %v353_v51  ;;  %v372_v2 = vrot.slane %v304_v54, %v942_v61  ;;  %v314_v3 = vcombine.high %v304_v54, %v304_v54 }
 0x120   :  { %v408_v7 = vrot.slane %v361_v55, %v942_v61  ;;  %v376_v10 = vrot.slane %v312_v59, %v942_v61  ;;  %v362_v20 = vcombine.high %v346_v8, %v346_v8  ;;  %v384_v28 = vrot.slane %v297_v12, %v942_v61 }
 0x121   :  { %237 = vbcast.lane.b32.xlu1 %v235_v21, 256  ;;  %v412_v14 = vrot.slane %v363_v63, %v942_v61  ;;  %v380_v18 = vrot.slane %v314_v3, %v942_v61  ;;  %v388_v34 = vrot.slane %v311_v19, %v942_v61  ;;  %v364_v48 = vcombine.high %v360_v16, %v360_v16 }
 0x122   :  { %181 = vbcast.lane.b32.xlu0 %v179_v23, 256  ;;  %v416_v23 = vrot.slane %v346_v8, %v942_v61 }
 0x123   :  { %v428_v63 = vrot.slane %v364_v48, %v942_v61 }
 0x125   :  { %244 = vbcast.lane.b32.xlu1 %v242_v24, 256  ;;  %v313_v24 = vcombine.high %v297_v12, %v297_v12 }
 0x126   :  { %188 = vbcast.lane.b32.xlu0 %v186_v26, 256 }
 0x127   :  { %v392_v39 = vrot.slane %v313_v24, %v942_v61 }
 0x129   :  { %251 = vbcast.lane.b32.xlu1 %v249_v30, 256 }
 0x12a   :  { %195 = vbcast.lane.b32.xlu0 %v193_v32, 256  ;;  %v420_v32 = vrot.slane %v360_v16, %v942_v61 }
 0x12d   :  { %258 = vbcast.lane.b32.xlu1 %v256_v6, 256 }
 0x12e   :  { %202 = vbcast.lane.b32.xlu0 %v200_v35, 256  ;;  %v424_v35 = vrot.slane %v362_v20, %v942_v61 }
 0x131   :  { %265 = vbcast.lane.b32.xlu1 %v263_v36, 256 }
 0x132   :  { %209 = vbcast.lane.b32.xlu0 %v207_v37, 256 }
 0x187   :  { %v217_v43 = vpop.permute.xlu1 %216 }
 0x188   :  { %v161_v44 = vpop.permute.xlu0 %160  ;;  %v453_v21 = vmul.f32 %v400_v4, %v217_v43 }
 0x189   :  { %v445_v25 = vmul.f32 %v368_v9, %v161_v44 }
 0x18a   :  { %v477_v36 = vsel %vm461_vm4, %v453_v21, 0.0  ;;  %v680_v21 = vld [vmem:[%s1041_s4] ss:$0 sm:$0xff]  ;;  %s805_s4 = scalar_lea.vmem %s669_s30, 32 }
 0x18b   :  { %v224_v49 = vpop.permute.xlu1 %223  ;;  %v462_v40 = vsel %vm461_vm4, %v445_v25, 0.0  ;;  %p806_p0 = scmp.ne.s32.totalorder %s669_s30, %s805_s4  ;;  %p811_p2 = scmp.lt.s32.totalorder %s805_s4, %s805_s4 }
 0x18c   :  { %v168_v52 = vpop.permute.xlu0 %167  ;;  %v454_v13 = vmul.f32 %v404_v60, %v224_v49 }
 0x18d   :  { %v446_v17 = vmul.f32 %v372_v2, %v168_v52  ;;  %v315_v52 = vcombine.high %v311_v19, %v311_v19  ;;  %p812_p3 = por %p811_p2, %p810_p1 }
 0x18e   :  { %v478_v29 = vsel %vm461_vm4, %v454_v13, 0.0 }
 0x18f   :  { %v231_v58 = vpop.permute.xlu1 %230  ;;  %v463_v6 = vsel %vm461_vm4, %v446_v17, 0.0  ;;  %v479_v5 = vadd.f32 %v478_v29, %v477_v36  ;;  %v396_v1 = vrot.slane %v315_v52, %v942_v61  ;;  %p813_p4 = pnand %p812_p3, %p806_p0 }
 0x190   :  { %v175_v62 = vpop.permute.xlu0 %174  ;;  %v455_v22 = vmul.f32 %v408_v7, %v231_v58  ;;  %v464_v44 = vadd.f32 %v463_v6, %v462_v40 }
 0x191   :  { %v447_v26 = vmul.f32 %v376_v10, %v175_v62 }
 0x192   :  { %v480_v37 = vsel %vm461_vm4, %v455_v22, 0.0 }
 0x193   :  { %v238_v11 = vpop.permute.xlu1 %237  ;;  %v465_v41 = vsel %vm461_vm4, %v447_v26, 0.0  ;;  %v481_v49 = vadd.f32 %v480_v37, %v479_v5 }
 0x194   :  { %v182_v15 = vpop.permute.xlu0 %181  ;;  %v456_v30 = vmul.f32 %v412_v14, %v238_v11  ;;  %v466_v53 = vadd.f32 %v465_v41, %v464_v44 }
 0x195   :  { %v448_v33 = vmul.f32 %v380_v18, %v182_v15 }
 0x196   :  { %v482_v45 = vsel %vm461_vm4, %v456_v30, 0.0 }
 0x197   :  { %v245_v27 = vpop.permute.xlu1 %244  ;;  %v467_v50 = vsel %vm461_vm4, %v448_v33, 0.0  ;;  %v483_v55 = vadd.f32 %v482_v45, %v481_v49 }
 0x198   :  { %v189_v31 = vpop.permute.xlu0 %188  ;;  %v457_v38 = vmul.f32 %v416_v23, %v245_v27  ;;  %v468_v58 = vadd.f32 %v467_v50, %v466_v53 }
 0x199   :  { %v449_v42 = vmul.f32 %v384_v28, %v189_v31 }
 0x19a   :  { %v484_v54 = vsel %vm461_vm4, %v457_v38, 0.0 }
 0x19b   :  { %v252_v43 = vpop.permute.xlu1 %251  ;;  %v469_v56 = vsel %vm461_vm4, %v449_v42, 0.0  ;;  %v485_v0 = vadd.f32 %v484_v54, %v483_v55 }
 0x19c   :  { %v458_v46 = vmul.f32 %v420_v32, %v252_v43  ;;  %v196_v47 = vpop.permute.xlu0 %195  ;;  %v470_v4 = vadd.f32 %v469_v56, %v468_v58 }
 0x19d   :  { %v450_v51 = vmul.f32 %v388_v34, %v196_v47 }
 0x19e   :  { %v486_v59 = vsel %vm461_vm4, %v458_v46, 0.0 }
 0x19f   :  { %v259_v57 = vpop.permute.xlu1 %258  ;;  %v471_v2 = vsel %vm461_vm4, %v450_v51, 0.0  ;;  %v487_v8 = vadd.f32 %v486_v59, %v485_v0 }
 0x1a0   :  { %v459_v60 = vmul.f32 %v424_v35, %v259_v57  ;;  %v203_v62 = vpop.permute.xlu0 %202  ;;  %v472_v11 = vadd.f32 %v471_v2, %v470_v4 }
 0x1a1   :  { %v451_v3 = vmul.f32 %v392_v39, %v203_v62 }
 0x1a2   :  { %v488_v7 = vsel %vm461_vm4, %v459_v60, 0.0 }
 0x1a3   :  { %v473_v9 = vsel %vm461_vm4, %v451_v3, 0.0  ;;  %v266_v10 = vpop.permute.xlu1 %265  ;;  %v489_v14 = vadd.f32 %v488_v7, %v487_v8 }
 0x1a4   :  { %v460_v12 = vmul.f32 %v428_v63, %v266_v10  ;;  %v210_v13 = vpop.permute.xlu0 %209  ;;  %v474_v16 = vadd.f32 %v473_v9, %v472_v11 }
 0x1a5   :  { %v452_v15 = vmul.f32 %v396_v1, %v210_v13 }
 0x1a6   :  { %v490_v17 = vsel %vm461_vm4, %v460_v12, 0.0 }
 0x1a7   :  { %v491_v18 = vadd.f32 %v490_v17, %v489_v14  ;;  %v475_v19 = vsel %vm461_vm4, %v452_v15, 0.0 }
 0x1a8   :  { %v476_v20 = vadd.f32 %v475_v19, %v474_v16 }
 0x1aa   :  { %v517_v61 = vcombine.low %v476_v20, %v491_v18 }
 0x1ac   :  { %756 = vmatmul.mubr.msk.f32.vlgmr.msra.gmra.mrb[0].mxu1 %vm31_vm0, %v517_v61 }
 0x27f   :  { %v634_v22 = vpop.f32.mrb[0].mxu1 }
 0x280   :  { %v635_v23 = vadd.f32 %v680_v21, %v634_v22  ;;  %v757_v24 = vpop.f32.mrb[1].mxu1 }
 0x282   :  { %v639_v25 = vcombine.high %v635_v23, %v635_v23  ;;  %v642_v26 = vsel %vm641_vm5, %v635_v23, -inf }
 0x283   :  { %v643_v27 = vrot.slane %v642_v26, 4 }
 0x284   :  { %v649_v28 = vsel %vm641_vm5, %v639_v25, -inf }
 0x285   :  { %v644_v29 = vmax.f32 %v642_v26, %v643_v27  ;;  %v650_v30 = vrot.slane %v649_v28, 4 }
 0x287   :  { %v645_v31 = vrot.slane %v644_v29, 2  ;;  %v651_v32 = vmax.f32 %v649_v28, %v650_v30 }
 0x289   :  { %v646_v6 = vmax.f32 %v644_v29, %v645_v31  ;;  %v652_v33 = vrot.slane %v651_v32, 2 }
 0x28b   :  { %v647_v34 = vrot.slane %v646_v6, 1  ;;  %v653_v35 = vmax.f32 %v651_v32, %v652_v33 }
 0x28d   :  { %v654_v36 = vrot.slane %v653_v35, 1  ;;  %v648_v37 = vmax.f32 %v646_v6, %v647_v34 }
 0x28f   :  { %v655_v38 = vmax.f32 %v653_v35, %v654_v36 }
 0x291   :  { %v659_v39 = vsel %vm658_vm6, %v655_v38, %v648_v37 }
 0x292   :  { %661 = vst [vmem:[#allocation2] sm:$0x3] %v659_v39 }
 0x293   :  { %816 = shalt.err (!%p813_p4)
}
 0x294   :  { %s817_s8 = scalar_lea.hbm %s1042_s5, 32 }
 0x295   :  { %p818_p5 = scmp.ne.s32.totalorder %s1042_s5, %s817_s8  ;;  %p821_p6 = scmp.lt.u32.totalorder %s817_s8, %s1042_s5 }
 0x297   :  { %p823_p7 = pnand %p821_p6, %p818_p5 }
 0x299   :  { %826 = shalt.err (!%p823_p7)
}
 0x29a   :  { %671 = dma.vmem_to_hbm [thread:$0]  %s669_s30, 32, %s1042_s5, [#allocation3]  }
 0x29b   :  { %827 = dma.done.wait [#allocation3], 32  }
 0x29c   :  { %828 = vsyncadd [#allocation3], 4294967264 }
 0x29d   :  { %675 = vsyncpa [#allocation3], 1 }

</bundles_post_ra>
